<compile_context>
chip_gen: v5e
topology: v5e:2x2
jax: 0.10.0
libtpu: 0.0.40
codegen_flags: <defaults>
</compile_context>

<pallas_src>
import jax
import jax.numpy as jnp
from jax.experimental import pallas as pl
from jax.experimental.pallas import tpu as pltpu


def _odeg_kernel(x_ref, adj_ref, m_ref, o_ref):
    # x_ref: (B*N, T*F) lane-dense slab; adj_ref: (B*N, B*N); m_ref: (T*F, T*F)
    x = x_ref[...]
    y = jnp.dot(adj_ref[...], x, preferred_element_type=jnp.float32)       # graph mix
    y = y + jnp.dot(x, m_ref[...], preferred_element_type=jnp.float32)     # feat/temporal mix + Euler
    o_ref[...] = jnp.maximum(y, 0.0).astype(o_ref.dtype)                   # ReLU


def odeg_forward(x, adj, w, d, w2, d2, alpha, *, time):
    """Pallas ODEG forward.  x: (B, N, T, F) float32."""
    B, N, T, F = x.shape
    BN, TF = B * N, T * F
    time = float(time)
    dt = x.dtype

    # ---- parameter glue (tiny matmuls / clamps / Kronecker folds) in plain JAX ----
    W_eff = jnp.dot(w * jnp.clip(d, 0.0, 1.0), w.T)        # (F, F)
    W2_eff = jnp.dot(w2 * jnp.clip(d2, 0.0, 1.0), w2.T)    # (T, T)

    # Fold sigmoid(alpha)/2 and the Euler step `time` into the adjacency, and
    # fold the batch into the node matmul via a block-diagonal adjacency.
    adj_scaled = (time * 0.5) * jax.nn.sigmoid(alpha)[:, None] * adj       # (N, N)
    adj_big = jnp.kron(jnp.eye(B, dtype=dt), adj_scaled)                   # (BN, BN)

    # Fold W (feature mix), W2 (temporal mix), the -2x term and the Euler axpy
    # into a single (T*F, T*F) right-multiply matrix.
    eye_T = jnp.eye(T, dtype=dt)
    eye_F = jnp.eye(F, dtype=dt)
    M = (time * (jnp.kron(eye_T, W_eff) + jnp.kron(W2_eff, eye_F))
         + (1.0 - 2.0 * time) * jnp.eye(TF, dtype=dt))                     # (TF, TF)

    # Lane-dense view of x: contiguous reshape, free in HBM.
    x2d = x.reshape(BN, TF)

    out2d = pl.pallas_call(
        _odeg_kernel,
        out_shape=jax.ShapeDtypeStruct((BN, TF), dt),
        grid_spec=pltpu.PrefetchScalarGridSpec(
            num_scalar_prefetch=0,
            grid=(1,),
            in_specs=[
                pl.BlockSpec((BN, TF), lambda i: (0, 0)),   # x slab
                pl.BlockSpec((BN, BN), lambda i: (0, 0)),   # block-diag scaled adjacency
                pl.BlockSpec((TF, TF), lambda i: (0, 0)),   # combined feature/temporal/Euler matrix
            ],
            out_specs=pl.BlockSpec((BN, TF), lambda i: (0, 0)),
        ),
        compiler_params=pltpu.CompilerParams(
            dimension_semantics=("arbitrary",)),
    )(x2d, adj_big, M)

    return out2d.reshape(B, N, T, F)


def odeg_reference(x, adj, w, d, w2, d2, alpha, *, time):
    """Pure-JAX reference mirroring the PyTorch module exactly."""
    a = jax.nn.sigmoid(alpha)[None, :, None, None]
    xa = jnp.einsum('ij,bjtf->bitf', adj, x)
    W = jnp.dot(w * jnp.clip(d, 0.0, 1.0), w.T)
    xw = jnp.einsum('bntf,fg->bntg', x, W)
    W2 = jnp.dot(w2 * jnp.clip(d2, 0.0, 1.0), w2.T)
    xw2 = jnp.einsum('bnkf,km->bnmf', x, W2)
    x0 = x
    f = a / 2.0 * xa - x + xw - x + xw2 - x + x0
    return jax.nn.relu(x + time * f)


if __name__ == "__main__":
    # Small shapes consistent with the module:
    #   batch=2, num_nodes=16, temporal_dim=8, feature_dim=32
    B, N, T, F = 2, 16, 8, 32
    TIME = 1.0

    key = jax.random.PRNGKey(0)
    kx, kadj, kw, kd, kw2, kd2, kalpha = jax.random.split(key, 7)

    x = jax.random.normal(kx, (B, N, T, F), dtype=jnp.float32)

    # Symmetric, row-normalized-ish adjacency (deterministic).
    adj_raw = jnp.abs(jax.random.normal(kadj, (N, N), dtype=jnp.float32))
    adj = (adj_raw + adj_raw.T) / (2.0 * N)

    # Parameters: module __init__ uses eye / ones / 0.8*ones; perturb
    # deterministically so every term of the forward is exercised.
    w = jnp.eye(F, dtype=jnp.float32) + 0.05 * jax.random.normal(kw, (F, F), dtype=jnp.float32)
    d = jnp.ones((F,), jnp.float32) + 0.3 * jax.random.normal(kd, (F,), dtype=jnp.float32)
    w2 = jnp.eye(T, dtype=jnp.float32) + 0.05 * jax.random.normal(kw2, (T, T), dtype=jnp.float32)
    d2 = jnp.ones((T,), jnp.float32) + 0.3 * jax.random.normal(kd2, (T,), dtype=jnp.float32)
    alpha = 0.8 * jnp.ones((N,), jnp.float32) + 0.1 * jax.random.normal(kalpha, (N,), dtype=jnp.float32)

    out = odeg_forward(x, adj, w, d, w2, d2, alpha, time=TIME)
    out = jax.block_until_ready(out)

    ref = odeg_reference(x, adj, w, d, w2, d2, alpha, time=TIME)
    ref = jax.block_until_ready(ref)

    assert out.shape == (B, N, T, F)
    assert jnp.allclose(out, ref, atol=1e-4, rtol=1e-4), "mismatch vs reference"

    print("KERNEL_OK")
</pallas_src>

<mosaic_0001>
module attributes {stable_mosaic.version = 11 : i64} {
  func.func @_odeg_kernel(%arg0: i32, %arg1: memref<32x256xf32, #tpu.memory_space<vmem>>, %arg2: memref<32x32xf32, #tpu.memory_space<vmem>>, %arg3: memref<256x256xf32, #tpu.memory_space<vmem>>, %arg4: memref<32x256xf32, #tpu.memory_space<vmem>>) attributes {dimension_semantics = [#tpu.dimension_semantics<arbitrary>], iteration_bounds = array<i64: 1>, scalar_prefetch = 0 : i64, scratch_operands = 0 : i64, tpu.core_type = #tpu.core_type<tc>, window_params = [{pipeline_mode = #tpu.pipeline_mode<synchronous>, transform_indices = @transform_0, window_bounds = array<i64: 32, 256>}, {pipeline_mode = #tpu.pipeline_mode<synchronous>, transform_indices = @transform_1, window_bounds = array<i64: 32, 32>}, {pipeline_mode = #tpu.pipeline_mode<synchronous>, transform_indices = @transform_2, window_bounds = array<i64: 256, 256>}, {pipeline_mode = #tpu.pipeline_mode<synchronous>, transform_indices = @transform_3, window_bounds = array<i64: 32, 256>}]} {
    %c0 = arith.constant 0 : index
    %c0_0 = arith.constant 0 : index
    %0 = vector.load %arg1[%c0, %c0_0] : memref<32x256xf32, #tpu.memory_space<vmem>>, vector<32x256xf32>
    %c0_1 = arith.constant 0 : index
    %c0_2 = arith.constant 0 : index
    %1 = vector.load %arg2[%c0_1, %c0_2] : memref<32x32xf32, #tpu.memory_space<vmem>>, vector<32x32xf32>
    %cst = arith.constant dense<0.000000e+00> : vector<32x256xf32>
    %2 = tpu.matmul %1, %0, %cst {dimension_numbers = #tpu.dot_dimension_numbers<[1], [0], [0], [1], [0, 0, 1, 1], [], []>} : vector<32x32xf32>, vector<32x256xf32>, vector<32x256xf32> -> vector<32x256xf32>
    %c0_3 = arith.constant 0 : index
    %c0_4 = arith.constant 0 : index
    %3 = vector.load %arg3[%c0_3, %c0_4] : memref<256x256xf32, #tpu.memory_space<vmem>>, vector<256x256xf32>
    %cst_5 = arith.constant dense<0.000000e+00> : vector<32x256xf32>
    %4 = tpu.matmul %0, %3, %cst_5 {dimension_numbers = #tpu.dot_dimension_numbers<[1], [0], [0], [1], [0, 0, 1, 1], [], []>} : vector<32x256xf32>, vector<256x256xf32>, vector<32x256xf32> -> vector<32x256xf32>
    %5 = arith.addf %2, %4 : vector<32x256xf32>
    %cst_6 = arith.constant 0.000000e+00 : f32
    %6 = vector.broadcast %cst_6 : f32 to vector<32x256xf32>
    %7 = arith.maximumf %5, %6 : vector<32x256xf32>
    %c0_7 = arith.constant 0 : index
    %c0_8 = arith.constant 0 : index
    %8 = vector.load %arg4[%c0_7, %c0_8] : memref<32x256xf32, #tpu.memory_space<vmem>>, vector<32x256xf32>
    tpu.vector_store %arg4[%c0_7, %c0_8], %7 {strides = array<i32>} : memref<32x256xf32, #tpu.memory_space<vmem>>, vector<32x256xf32>,
    return
  }
  func.func @transform_0(%arg0: i32) -> (i32, i32) {
    %c0_i32 = arith.constant 0 : i32
    %c0_i32_0 = arith.constant 0 : i32
    %c0_i32_1 = arith.constant 0 : i32
    return %c0_i32, %c0_i32_0 : i32, i32
  }
  func.func @transform_1(%arg0: i32) -> (i32, i32) {
    %c0_i32 = arith.constant 0 : i32
    %c0_i32_0 = arith.constant 0 : i32
    %c0_i32_1 = arith.constant 0 : i32
    return %c0_i32, %c0_i32_0 : i32, i32
  }
  func.func @transform_2(%arg0: i32) -> (i32, i32) {
    %c0_i32 = arith.constant 0 : i32
    %c0_i32_0 = arith.constant 0 : i32
    %c0_i32_1 = arith.constant 0 : i32
    return %c0_i32, %c0_i32_0 : i32, i32
  }
  func.func @transform_3(%arg0: i32) -> (i32, i32) {
    %c0_i32 = arith.constant 0 : i32
    %c0_i32_0 = arith.constant 0 : i32
    %c0_i32_1 = arith.constant 0 : i32
    return %c0_i32, %c0_i32_0 : i32, i32
  }
}

</mosaic_0001>

<bundles_post_ra>
// kernel: tpu_custom_call.1
= control target key start
LH: loop header
LB: loop body
LE: loop exit
PB: predicated region body
PF: predicated region fallthrough
CT: control target
= control target key end

     0   :  { %8 = vsyncpa [#allocation3], 0  ;;  %s536_s0 = inlined_call_operand.hbm [shape: f32[32,256], index: 0, kind: input, shape index: {}]   ;;  %s537_s1 = inlined_call_operand.hbm [shape: f32[32,32], index: 1, kind: input, shape index: {}]   ;;  %s538_s2 = inlined_call_operand.hbm [shape: f32[256,256], index: 2, kind: input, shape index: {}]   ;;  %s539_s3 = inlined_call_operand.hbm [shape: f32[32,256], index: 3, kind: output, shape index: {}]  }
   0x1   :  { %9 = vsyncpa [#allocation6], 0  ;;  %s28_s14 = sshll.u32 %s537_s1, 4  ;;  %s29_s14 = int_to_ptr.hbm [resolvable:$true] %s28_s14 }
   0x2   :  { %10 = vsyncpa [#allocation4], 0  ;;  %s487_s15 = smov [#allocation5]   ;;  %s15_s19 = sshll.u32 %s536_s0, 4  ;;  %s16_s19 = int_to_ptr.hbm [resolvable:$true] %s15_s19 }
   0x3   :  { %s30_s16 = sshll.u32 %s487_s15, 4  ;;  %s488_s20 = smov 128   ;;  %s31_s16 = int_to_ptr.vmem [resolvable:$true] %s30_s16 }
   0x4   :  { %s489_s21 = smov 8   ;;  %s490_s22 = smov [#allocation2]  }
   0x5   :  { %36 = dma.hbm_to_vmem [thread:$0]  %s29_s14, 512, %s31_s16, [#allocation6], %s488_s20, %s488_s20, %s489_s21  }
   0x6   :  { %s17_s23 = sshll.u32 %s490_s22, 4  ;;  %s491_s24 = smov 256   ;;  %s18_s23 = int_to_ptr.vmem [resolvable:$true] %s17_s23 }
   0x7   :  { %s492_s25 = smov 16   ;;  %s41_s27 = sshll.u32 %s538_s2, 4  ;;  %s42_s27 = int_to_ptr.hbm [resolvable:$true] %s41_s27 }
   0x8   :  { %23 = dma.hbm_to_vmem [thread:$0]  %s16_s19, 1024, %s18_s23, [#allocation3], %s491_s24, %s491_s24, %s492_s25  }
   0x9   :  { %s493_s28 = smov [#allocation7]  }
   0xa   :  { %s43_s0 = sshll.u32 %s493_s28, 4  ;;  %s44_s0 = int_to_ptr.vmem [resolvable:$true] %s43_s0 }
   0xb   :  { %49 = dma.hbm_to_vmem [thread:$0]  %s42_s27, 8192, %s44_s0, [#allocation6], %s491_s24, %s491_s24, %s492_s25  }
   0xc   :  { %481 = dma.done.wait [#allocation3], 1024  }
   0xd   :  { %482 = vsyncadd [#allocation3], 4294966272 }
   0xe   :  { %483 = dma.done.wait [#allocation6], 8704  }
   0xf   :  { %484 = vsyncadd [#allocation6], 4294958592  ;;  %v104_v0 = vld [vmem:[#allocation7 + $0xf0] sm:$0xff]  ;;  %v105_v2 = vld [vmem:[#allocation7 + $0xf8] sm:$0xff]  ;;  %vm254_vm0 = vcmask 261120   ;;  %s494_s2 = smov [#allocation8]  }
  0x10   :  { %v136_v1 = vld [vmem:[#allocation7 + $0x1f0] sm:$0xff]  ;;  %138 = vmatpush.msra.mxu0 %v104_v0  ;;  %v137_v3 = vld [vmem:[#allocation7 + $0x1f8] sm:$0xff]  ;;  %v102_v4 = vld [vmem:[#allocation7 + $0xe0] sm:$0xff]  ;;  %196 = vmatpush.msra.mxu2 %v105_v2  ;;  %s345_s29 = sshll.u32 %s494_s2, 4  ;;  %s347_s5 = sshll.u32 %s539_s3, 4  ;;  %s346_s29 = int_to_ptr.vmem [resolvable:$true] %s345_s29  ;;  %s348_s5 = int_to_ptr.hbm [resolvable:$true] %s347_s5 }
  0x11   :  { %167 = vmatpush.msra.mxu1 %v136_v1  ;;  %v134_v5 = vld [vmem:[#allocation7 + $0x1e0] sm:$0xff]  ;;  %225 = vmatpush.msra.mxu3 %v137_v3  ;;  %v103_v6 = vld [vmem:[#allocation7 + $0xe8] sm:$0xff]  ;;  %v100_v8 = vld [vmem:[#allocation7 + $0xd0] sm:$0xff] }
  0x12   :  { %v135_v7 = vld [vmem:[#allocation7 + $0x1e8] sm:$0xff]  ;;  %139 = vmatpush.msra.mxu0 %v102_v4  ;;  %v132_v9 = vld [vmem:[#allocation7 + $0x1d0] sm:$0xff]  ;;  %v101_v10 = vld [vmem:[#allocation7 + $0xd8] sm:$0xff]  ;;  %197 = vmatpush.msra.mxu2 %v103_v6 }
  0x13   :  { %168 = vmatpush.msra.mxu1 %v134_v5  ;;  %v133_v11 = vld [vmem:[#allocation7 + $0x1d8] sm:$0xff]  ;;  %226 = vmatpush.msra.mxu3 %v135_v7  ;;  %v98_v12 = vld [vmem:[#allocation7 + $0xc0] sm:$0xff]  ;;  %v99_v14 = vld [vmem:[#allocation7 + $0xc8] sm:$0xff] }
  0x14   :  { %v130_v13 = vld [vmem:[#allocation7 + $0x1c0] sm:$0xff]  ;;  %140 = vmatpush.msra.mxu0 %v100_v8  ;;  %v131_v15 = vld [vmem:[#allocation7 + $0x1c8] sm:$0xff]  ;;  %198 = vmatpush.msra.mxu2 %v101_v10  ;;  %v96_v16 = vld [vmem:[#allocation7 + $0xb0] sm:$0xff] }
  0x15   :  { %169 = vmatpush.msra.mxu1 %v132_v9  ;;  %227 = vmatpush.msra.mxu3 %v133_v11  ;;  %v128_v17 = vld [vmem:[#allocation7 + $0x1b0] sm:$0xff]  ;;  %v97_v18 = vld [vmem:[#allocation7 + $0xb8] sm:$0xff]  ;;  %v94_v20 = vld [vmem:[#allocation7 + $0xa0] sm:$0xff] }
  0x16   :  { %141 = vmatpush.msra.mxu0 %v98_v12  ;;  %v129_v19 = vld [vmem:[#allocation7 + $0x1b8] sm:$0xff]  ;;  %199 = vmatpush.msra.mxu2 %v99_v14  ;;  %v126_v21 = vld [vmem:[#allocation7 + $0x1a0] sm:$0xff]  ;;  %v95_v22 = vld [vmem:[#allocation7 + $0xa8] sm:$0xff] }
  0x17   :  { %170 = vmatpush.msra.mxu1 %v130_v13  ;;  %228 = vmatpush.msra.mxu3 %v131_v15  ;;  %v127_v23 = vld [vmem:[#allocation7 + $0x1a8] sm:$0xff]  ;;  %v92_v24 = vld [vmem:[#allocation7 + $0x90] sm:$0xff]  ;;  %v93_v26 = vld [vmem:[#allocation7 + $0x98] sm:$0xff] }
  0x18   :  { %142 = vmatpush.msra.mxu0 %v96_v16  ;;  %200 = vmatpush.msra.mxu2 %v97_v18  ;;  %v124_v25 = vld [vmem:[#allocation7 + $0x190] sm:$0xff]  ;;  %v125_v27 = vld [vmem:[#allocation7 + $0x198] sm:$0xff]  ;;  %v90_v28 = vld [vmem:[#allocation7 + $0x80] sm:$0xff] }
  0x19   :  { %171 = vmatpush.msra.mxu1 %v128_v17  ;;  %229 = vmatpush.msra.mxu3 %v129_v19  ;;  %v122_v29 = vld [vmem:[#allocation7 + $0x180] sm:$0xff]  ;;  %v91_v30 = vld [vmem:[#allocation7 + $0x88] sm:$0xff]  ;;  %v88_v32 = vld [vmem:[#allocation7 + $0x70] sm:$0xff] }
  0x1a   :  { %143 = vmatpush.msra.mxu0 %v94_v20  ;;  %201 = vmatpush.msra.mxu2 %v95_v22  ;;  %v123_v31 = vld [vmem:[#allocation7 + $0x188] sm:$0xff]  ;;  %v120_v33 = vld [vmem:[#allocation7 + $0x170] sm:$0xff]  ;;  %v89_v34 = vld [vmem:[#allocation7 + $0x78] sm:$0xff] }
  0x1b   :  { %172 = vmatpush.msra.mxu1 %v126_v21  ;;  %230 = vmatpush.msra.mxu3 %v127_v23  ;;  %v121_v35 = vld [vmem:[#allocation7 + $0x178] sm:$0xff]  ;;  %v86_v36 = vld [vmem:[#allocation7 + $0x60] sm:$0xff]  ;;  %v87_v38 = vld [vmem:[#allocation7 + $0x68] sm:$0xff] }
  0x1c   :  { %144 = vmatpush.msra.mxu0 %v92_v24  ;;  %202 = vmatpush.msra.mxu2 %v93_v26  ;;  %v118_v37 = vld [vmem:[#allocation7 + $0x160] sm:$0xff]  ;;  %v119_v39 = vld [vmem:[#allocation7 + $0x168] sm:$0xff]  ;;  %v84_v40 = vld [vmem:[#allocation7 + $0x50] sm:$0xff] }
  0x1d   :  { %173 = vmatpush.msra.mxu1 %v124_v25  ;;  %231 = vmatpush.msra.mxu3 %v125_v27  ;;  %v116_v41 = vld [vmem:[#allocation7 + $0x150] sm:$0xff]  ;;  %v85_v42 = vld [vmem:[#allocation7 + $0x58] sm:$0xff]  ;;  %v82_v44 = vld [vmem:[#allocation7 + $0x40] sm:$0xff] }
  0x1e   :  { %145 = vmatpush.msra.mxu0 %v90_v28  ;;  %203 = vmatpush.msra.mxu2 %v91_v30  ;;  %v117_v43 = vld [vmem:[#allocation7 + $0x158] sm:$0xff]  ;;  %v114_v45 = vld [vmem:[#allocation7 + $0x140] sm:$0xff]  ;;  %v83_v46 = vld [vmem:[#allocation7 + $0x48] sm:$0xff] }
  0x1f   :  { %174 = vmatpush.msra.mxu1 %v122_v29  ;;  %232 = vmatpush.msra.mxu3 %v123_v31  ;;  %v115_v47 = vld [vmem:[#allocation7 + $0x148] sm:$0xff]  ;;  %v80_v48 = vld [vmem:[#allocation7 + $0x30] sm:$0xff]  ;;  %v81_v50 = vld [vmem:[#allocation7 + $0x38] sm:$0xff] }
  0x20   :  { %146 = vmatpush.msra.mxu0 %v88_v32  ;;  %204 = vmatpush.msra.mxu2 %v89_v34  ;;  %v112_v49 = vld [vmem:[#allocation7 + $0x130] sm:$0xff]  ;;  %v113_v51 = vld [vmem:[#allocation7 + $0x138] sm:$0xff]  ;;  %v78_v52 = vld [vmem:[#allocation7 + $0x20] sm:$0xff] }
  0x21   :  { %175 = vmatpush.msra.mxu1 %v120_v33  ;;  %233 = vmatpush.msra.mxu3 %v121_v35  ;;  %v110_v53 = vld [vmem:[#allocation7 + $0x120] sm:$0xff]  ;;  %v79_v54 = vld [vmem:[#allocation7 + $0x28] sm:$0xff]  ;;  %v76_v56 = vld [vmem:[#allocation7 + $0x10] sm:$0xff] }
  0x22   :  { %147 = vmatpush.msra.mxu0 %v86_v36  ;;  %205 = vmatpush.msra.mxu2 %v87_v38  ;;  %v111_v55 = vld [vmem:[#allocation7 + $0x128] sm:$0xff]  ;;  %v108_v57 = vld [vmem:[#allocation7 + $0x110] sm:$0xff]  ;;  %v77_v58 = vld [vmem:[#allocation7 + $0x18] sm:$0xff] }
  0x23   :  { %176 = vmatpush.msra.mxu1 %v118_v37  ;;  %234 = vmatpush.msra.mxu3 %v119_v39  ;;  %v109_v59 = vld [vmem:[#allocation7 + $0x118] sm:$0xff]  ;;  %v74_v60 = vld [vmem:[#allocation7] sm:$0xff]  ;;  %v75_v62 = vld [vmem:[#allocation7 + $0x8] sm:$0xff] }
  0x24   :  { %148 = vmatpush.msra.mxu0 %v84_v40  ;;  %206 = vmatpush.msra.mxu2 %v85_v42  ;;  %v106_v61 = vld [vmem:[#allocation7 + $0x100] sm:$0xff]  ;;  %v107_v63 = vld [vmem:[#allocation7 + $0x108] sm:$0xff]  ;;  %v68_v2 = vld [vmem:[#allocation2 + $0x30] sm:$0xff] }
  0x25   :  { %177 = vmatpush.msra.mxu1 %v116_v41  ;;  %235 = vmatpush.msra.mxu3 %v117_v43  ;;  %v62_v0 = vld [vmem:[#allocation2] sm:$0xff]  ;;  %v63_v1 = vld [vmem:[#allocation2 + $0x8] sm:$0xff]  ;;  %v69_v3 = vld [vmem:[#allocation2 + $0x38] sm:$0xff] }
  0x26   :  { %149 = vmatpush.msra.mxu0 %v82_v44  ;;  %207 = vmatpush.msra.mxu2 %v83_v46  ;;  %v66_v4 = vld [vmem:[#allocation2 + $0x20] sm:$0xff]  ;;  %v67_v5 = vld [vmem:[#allocation2 + $0x28] sm:$0xff]  ;;  %v64_v6 = vld [vmem:[#allocation2 + $0x10] sm:$0xff] }
  0x27   :  { %178 = vmatpush.msra.mxu1 %v114_v45  ;;  %236 = vmatpush.msra.mxu3 %v115_v47  ;;  %v65_v7 = vld [vmem:[#allocation2 + $0x18] sm:$0xff]  ;;  %v70_v8 = vld [vmem:[#allocation5] sm:$0xff]  ;;  %v72_v9 = vld [vmem:[#allocation5 + $0x10] sm:$0xff] }
  0x28   :  { %150 = vmatpush.msra.mxu0 %v80_v48  ;;  %208 = vmatpush.msra.mxu2 %v81_v50  ;;  %v71_v10 = vld [vmem:[#allocation5 + $0x8] sm:$0xff]  ;;  %v73_v11 = vld [vmem:[#allocation5 + $0x18] sm:$0xff] }
  0x29   :  { %179 = vmatpush.msra.mxu1 %v112_v49  ;;  %237 = vmatpush.msra.mxu3 %v113_v51 }
  0x2a   :  { %151 = vmatpush.msra.mxu0 %v78_v52  ;;  %209 = vmatpush.msra.mxu2 %v79_v54 }
  0x2b   :  { %180 = vmatpush.msra.mxu1 %v110_v53  ;;  %238 = vmatpush.msra.mxu3 %v111_v55 }
  0x2c   :  { %152 = vmatpush.msra.mxu0 %v76_v56  ;;  %210 = vmatpush.msra.mxu2 %v77_v58 }
  0x2d   :  { %181 = vmatpush.msra.mxu1 %v108_v57  ;;  %239 = vmatpush.msra.mxu3 %v109_v59 }
  0x2e   :  { %153 = vmatpush.msra.mxu0 %v74_v60  ;;  %211 = vmatpush.msra.mxu2 %v75_v62 }
  0x2f   :  { %182 = vmatpush.msra.mxu1 %v106_v61  ;;  %240 = vmatpush.msra.mxu3 %v107_v63 }
  0x30   :  { %154 = vmatmul.f32.vlgmr.msra.gmra.mxu0 %v62_v0  ;;  %183 = vmatmul.f32.vlgmr.msra.gmra.mxu1 %v63_v1 }
  0x31   :  { %212 = vmatmul.f32.vlgmr.msra.gmra.mxu2 %v62_v0  ;;  %241 = vmatmul.f32.vlgmr.msra.gmra.mxu3 %v63_v1 }
  0x32   :  { %369 = vmatpush.msrb.mxu2 %v68_v2  ;;  %373 = vmatpush.msrb.mxu3 %v69_v3 }
  0x33   :  { %279 = vmatpush.msrb.mxu0 %v68_v2  ;;  %308 = vmatpush.msrb.mxu1 %v69_v3 }
  0x34   :  { %370 = vmatpush.msrb.mxu2 %v66_v4  ;;  %374 = vmatpush.msrb.mxu3 %v67_v5 }
  0x35   :  { %280 = vmatpush.msrb.mxu0 %v66_v4  ;;  %309 = vmatpush.msrb.mxu1 %v67_v5 }
  0x36   :  { %371 = vmatpush.msrb.mxu2 %v64_v6  ;;  %375 = vmatpush.msrb.mxu3 %v65_v7 }
  0x37   :  { %281 = vmatpush.msrb.mxu0 %v64_v6  ;;  %310 = vmatpush.msrb.mxu1 %v65_v7 }
  0x38   :  { %157 = vmatmul.f32.gmra.mxu0 %v64_v6  ;;  %186 = vmatmul.f32.gmra.mxu1 %v65_v7 }
  0x39   :  { %215 = vmatmul.f32.gmra.mxu2 %v64_v6  ;;  %244 = vmatmul.f32.gmra.mxu3 %v65_v7 }
  0x3a   :  { %372 = vmatpush.msrb.mxu2 %v62_v0  ;;  %376 = vmatpush.msrb.mxu3 %v63_v1 }
  0x3b   :  { %282 = vmatpush.msrb.mxu0 %v62_v0  ;;  %311 = vmatpush.msrb.mxu1 %v63_v1 }
  0x40   :  { %160 = vmatmul.f32.gmra.mxu0 %v66_v4  ;;  %189 = vmatmul.f32.gmra.mxu1 %v67_v5 }
  0x41   :  { %218 = vmatmul.f32.gmra.mxu2 %v66_v4  ;;  %247 = vmatmul.f32.gmra.mxu3 %v67_v5 }
  0x48   :  { %163 = vmatmul.f32.gmra.mxu0 %v68_v2  ;;  %192 = vmatmul.f32.gmra.mxu1 %v69_v3 }
  0x49   :  { %221 = vmatmul.f32.gmra.mxu2 %v68_v2  ;;  %250 = vmatmul.f32.gmra.mxu3 %v69_v3 }
  0x50   :  { %361 = vmatmul.msk.f32.vlgmr.msrb.gmra.mxu0 %vm254_vm0, %v70_v8  ;;  %365 = vmatmul.msk.f32.vlgmr.msrb.gmra.mxu1 %vm254_vm0, %v70_v8 }
  0x51   :  { %363 = vmatmul.msk.f32.vlgmr.msrb.gmra.mxu2 %vm254_vm0, %v72_v9  ;;  %367 = vmatmul.msk.f32.vlgmr.msrb.gmra.mxu3 %vm254_vm0, %v72_v9 }
  0x58   :  { %362 = vmatmul.msk.f32.gmra.mxu0 %vm254_vm0, %v71_v10  ;;  %366 = vmatmul.msk.f32.gmra.mxu1 %vm254_vm0, %v71_v10 }
  0x59   :  { %364 = vmatmul.msk.f32.gmra.mxu2 %vm254_vm0, %v73_v11  ;;  %368 = vmatmul.msk.f32.gmra.mxu3 %vm254_vm0, %v73_v11 }
  0xad   :  { %v155_v12 = vpop.f32.mrf.mxu0  ;;  %v184_v13 = vpop.f32.mrf.mxu1 }
  0xae   :  { %v185_v26 = vadd.f32 %v184_v13, %v155_v12 }
  0xb4   :  { %v213_v14 = vpop.f32.mrf.mxu2  ;;  %v242_v15 = vpop.f32.mrf.mxu3 }
  0xb5   :  { %v158_v16 = vpop.f32.mrf.mxu0  ;;  %v187_v17 = vpop.f32.mrf.mxu1  ;;  %v243_v27 = vadd.f32 %v242_v15, %v213_v14 }
  0xb6   :  { %v188_v38 = vadd.f32 %v187_v17, %v158_v16 }
  0xbc   :  { %v216_v18 = vpop.f32.mrf.mxu2  ;;  %v245_v19 = vpop.f32.mrf.mxu3 }
  0xbd   :  { %v161_v20 = vpop.f32.mrf.mxu0  ;;  %v190_v21 = vpop.f32.mrf.mxu1  ;;  %v246_v39 = vadd.f32 %v245_v19, %v216_v18 }
  0xbe   :  { %v191_v36 = vadd.f32 %v190_v21, %v161_v20 }
  0xc4   :  { %v219_v22 = vpop.f32.mrf.mxu2  ;;  %v248_v23 = vpop.f32.mrf.mxu3 }
  0xc5   :  { %v164_v24 = vpop.f32.mrf.mxu0  ;;  %v193_v25 = vpop.f32.mrf.mxu1  ;;  %v249_v37 = vadd.f32 %v248_v23, %v219_v22 }
  0xc6   :  { %v194_v52 = vadd.f32 %v193_v25, %v164_v24 }
  0xcc   :  { %v222_v28 = vpop.f32.mrf.mxu2  ;;  %v251_v29 = vpop.f32.mrf.mxu3 }
  0xcd   :  { %v284_v30 = vpop.f32.mrf.mxu0  ;;  %v313_v31 = vpop.f32.mrf.mxu1  ;;  %v252_v53 = vadd.f32 %v251_v29, %v222_v28 }
  0xce   :  { %v285_v32 = vadd.f32 %v284_v30, %v185_v26  ;;  %v314_v33 = vadd.f32 %v313_v31, %v243_v27 }
  0xd0   :  { %v325_v34 = vmax.f32 %v285_v32, 0.0  ;;  %v326_v35 = vmax.f32 %v314_v33, 0.0 }
  0xd2   :  { %333 = vst [vmem:[#allocation8] sm:$0xff] %v325_v34 }
  0xd3   :  { %334 = vst [vmem:[#allocation8 + $0x8] sm:$0xff] %v326_v35 }
  0xd4   :  { %v290_v40 = vpop.f32.mrf.mxu2  ;;  %v319_v41 = vpop.f32.mrf.mxu3 }
  0xd5   :  { %v291_v42 = vadd.f32 %v290_v40, %v191_v36  ;;  %v320_v43 = vadd.f32 %v319_v41, %v249_v37  ;;  %v287_v44 = vpop.f32.mrf.mxu0  ;;  %v316_v45 = vpop.f32.mrf.mxu1 }
  0xd6   :  { %v288_v46 = vadd.f32 %v287_v44, %v188_v38  ;;  %v317_v47 = vadd.f32 %v316_v45, %v246_v39 }
  0xd7   :  { %v329_v48 = vmax.f32 %v291_v42, 0.0  ;;  %v330_v49 = vmax.f32 %v320_v43, 0.0 }
  0xd8   :  { %v327_v50 = vmax.f32 %v288_v46, 0.0  ;;  %v328_v51 = vmax.f32 %v317_v47, 0.0 }
  0xd9   :  { %337 = vst [vmem:[#allocation8 + $0x20] sm:$0xff] %v329_v48 }
  0xda   :  { %338 = vst [vmem:[#allocation8 + $0x28] sm:$0xff] %v330_v49 }
  0xdb   :  { %335 = vst [vmem:[#allocation8 + $0x10] sm:$0xff] %v327_v50 }
  0xdc   :  { %336 = vst [vmem:[#allocation8 + $0x18] sm:$0xff] %v328_v51  ;;  %v293_v54 = vpop.f32.mrf.mxu2  ;;  %v322_v55 = vpop.f32.mrf.mxu3 }
  0xdd   :  { %v294_v56 = vadd.f32 %v293_v54, %v194_v52  ;;  %v323_v57 = vadd.f32 %v322_v55, %v252_v53 }
  0xdf   :  { %v331_v58 = vmax.f32 %v294_v56, 0.0  ;;  %v332_v59 = vmax.f32 %v323_v57, 0.0 }
  0xe1   :  { %339 = vst [vmem:[#allocation8 + $0x30] sm:$0xff] %v331_v58 }
  0xe2   :  { %340 = vst [vmem:[#allocation8 + $0x38] sm:$0xff] %v332_v59 }
  0xe3   :  { %353 = dma.vmem_to_hbm [thread:$0]  %s346_s29, 1024, %s348_s5, [#allocation4], %s491_s24, %s491_s24, %s492_s25  }
  0xe4   :  { %485 = dma.done.wait [#allocation4], 1024  }
  0xe5   :  { %486 = vsyncadd [#allocation4], 4294966272 }
  0xe6   :  { %358 = vsyncpa [#allocation3], 1 }
  0xe7   :  { %359 = vsyncpa [#allocation6], 1 }
  0xe8   :  { %360 = vsyncpa [#allocation4], 1 }

</bundles_post_ra>
